<compile_context>
chip_gen: v5e
topology: v5e:2x2
jax: 0.10.0
libtpu: 0.0.40
codegen_flags: <defaults>
</compile_context>

<pallas_src>
import functools

import jax
import jax.numpy as jnp
from jax import lax
from jax.experimental import pallas as pl
from jax.experimental.pallas import tpu as pltpu


# ----------------------------------------------------------------------------
# Fused MHA kernel: one grid step == one batch element, everything in VMEM.
# ----------------------------------------------------------------------------
def _mha_kernel(x_ref, wqkv_ref, bqkv_ref, wo_ref, bo_ref, o_ref, *, num_heads):
    """x_ref: [1, L, F]; wqkv_ref: [F, 3E]; bqkv_ref: [1, 3E];
    wo_ref: [E, E]; bo_ref: [1, E]; o_ref: [1, L, E]."""
    E = wo_ref.shape[0]
    D = E // num_heads

    x = x_ref[0]                                                 # [L, F]

    # Fused QKV projection.  The outer linear_q/k/v, the MHA in-projection and
    # the 1/sqrt(head_dim) query scale are all pre-folded into wqkv/bqkv at
    # parameter-prep time, so this is a single MXU matmul.
    qkv = jnp.dot(x, wqkv_ref[...],
                  preferred_element_type=jnp.float32) + bqkv_ref[...]  # [L, 3E]
    q = qkv[:, :E]
    k = qkv[:, E:2 * E]
    v = qkv[:, 2 * E:]

    # Per-head scaled-dot-product attention (static unroll over the heads --
    # tiny [L, D] tiles, the unroll keeps everything visible to the scheduler).
    head_outs = []
    for h in range(num_heads):
        sl = slice(h * D, (h + 1) * D)
        qh, kh, vh = q[:, sl], k[:, sl], v[:, sl]                # [L, D] each
        # scores = qh @ kh.T  (query scale already folded into the weights)
        s = lax.dot_general(qh, kh, (((1,), (1,)), ((), ())),
                            preferred_element_type=jnp.float32)  # [L, L]
        s = s - jnp.max(s, axis=-1, keepdims=True)
        p = jnp.exp(s)
        p = p / jnp.sum(p, axis=-1, keepdims=True)
        head_outs.append(jnp.dot(p, vh,
                                 preferred_element_type=jnp.float32))  # [L, D]

    attn = jnp.concatenate(head_outs, axis=-1)                   # [L, E]

    # Output projection (weights already stored [K, N]).
    y = jnp.dot(attn, wo_ref[...],
                preferred_element_type=jnp.float32) + bo_ref[...]        # [L, E]
    o_ref[0] = y.astype(o_ref.dtype)


# ----------------------------------------------------------------------------
# One-time parameter preparation (NOT inside the jitted forward):
#  - fold linear_q/k/v into the MHA in-projections,
#  - fold the 1/sqrt(head_dim) scaling into the Q weights,
#  - pack into a single fused [F, 3E] QKV weight in [K, N] layout,
#  - store out_proj weight as [K, N].
# ----------------------------------------------------------------------------
def prepare_params(params, num_heads=8):
    (wq, bq, wk, bk, wv, bv, w_in, b_in, wo, bo) = params
    E = wo.shape[0]
    D = E // num_heads
    scale = 1.0 / (D ** 0.5)

    wiq, wik, wiv = w_in[:E], w_in[E:2 * E], w_in[2 * E:]
    biq, bik, biv = b_in[:E], b_in[E:2 * E], b_in[2 * E:]

    wq_eff = (wq.T @ wiq.T) * scale               # [F, E]
    bq_eff = (bq @ wiq.T + biq) * scale           # [E]
    wk_eff = wk.T @ wik.T
    bk_eff = bk @ wik.T + bik
    wv_eff = wv.T @ wiv.T
    bv_eff = bv @ wiv.T + biv

    w_qkv = jnp.concatenate([wq_eff, wk_eff, wv_eff], axis=1)       # [F, 3E]
    b_qkv = jnp.concatenate([bq_eff, bk_eff, bv_eff])[None, :]      # [1, 3E]
    return (w_qkv, b_qkv, wo.T, bo[None, :])


# ----------------------------------------------------------------------------
# Forward pass: a single pallas_call gridded over batch.
# ----------------------------------------------------------------------------
@functools.partial(jax.jit, static_argnames=("num_heads",))
def mha_forward(x, prepped, num_heads=8):
    """x: [L, B, F] float32 (seq, batch, feature -- PyTorch layout).
    Returns [L, B, E]."""
    w_qkv, b_qkv, wo_t, bo = prepped
    L, B, F = x.shape
    E = wo_t.shape[0]

    x_b = jnp.transpose(x, (1, 0, 2))                           # [B, L, F]
    kernel = functools.partial(_mha_kernel, num_heads=num_heads)

    out = pl.pallas_call(
        kernel,
        out_shape=jax.ShapeDtypeStruct((B, L, E), jnp.float32),
        grid=(B,),
        in_specs=[
            pl.BlockSpec((1, L, F), lambda b: (b, 0, 0)),       # x tile
            pl.BlockSpec((F, 3 * E), lambda b: (0, 0)),         # fused QKV W
            pl.BlockSpec((1, 3 * E), lambda b: (0, 0)),         # fused QKV b
            pl.BlockSpec((E, E), lambda b: (0, 0)),             # out_proj W
            pl.BlockSpec((1, E), lambda b: (0, 0)),             # out_proj b
        ],
        out_specs=pl.BlockSpec((1, L, E), lambda b: (b, 0, 0)),
        compiler_params=pltpu.CompilerParams(
            dimension_semantics=("parallel",)),
    )(x_b, w_qkv, b_qkv, wo_t, bo)

    return jnp.transpose(out, (1, 0, 2))                        # [L, B, E]


# ----------------------------------------------------------------------------
# Pure-JAX reference (unfused, exact PyTorch nn.MultiheadAttention semantics).
# ----------------------------------------------------------------------------
def reference_forward(x, params, num_heads=8):
    (wq, bq, wk, bk, wv, bv, w_in, b_in, wo, bo) = params
    L, B, F = x.shape
    E = wo.shape[0]
    H = num_heads
    D = E // H

    q = x @ wq.T + bq
    k = x @ wk.T + bk
    v = x @ wv.T + bv

    wiq, wik, wiv = w_in[:E], w_in[E:2 * E], w_in[2 * E:]
    biq, bik, biv = b_in[:E], b_in[E:2 * E], b_in[2 * E:]
    q = q @ wiq.T + biq
    k = k @ wik.T + bik
    v = v @ wiv.T + biv

    qh = q.reshape(L, B, H, D)
    kh = k.reshape(L, B, H, D)
    vh = v.reshape(L, B, H, D)
    s = jnp.einsum("qbhd,kbhd->bhqk", qh, kh) * (1.0 / (D ** 0.5))
    p = jax.nn.softmax(s, axis=-1)
    o = jnp.einsum("bhqk,kbhd->qbhd", p, vh).reshape(L, B, E)
    return o @ wo.T + bo


# ----------------------------------------------------------------------------
# Deterministic parameter init (PyTorch-shaped weights).
# ----------------------------------------------------------------------------
def init_params(key, embed_dim=128, feature_dim=5):
    E, F = embed_dim, feature_dim

    def u(k, shape, fan_in):
        bound = 1.0 / (fan_in ** 0.5)
        return jax.random.uniform(k, shape, jnp.float32, -bound, bound)

    ks = jax.random.split(key, 10)
    wq = u(ks[0], (E, F), F); bq = u(ks[1], (E,), F)
    wk = u(ks[2], (E, F), F); bk = u(ks[3], (E,), F)
    wv = u(ks[4], (E, F), F); bv = u(ks[5], (E,), F)
    w_in = u(ks[6], (3 * E, E), E); b_in = u(ks[7], (3 * E,), E)
    wo = u(ks[8], (E, E), E); bo = u(ks[9], (E,), E)
    return (wq, bq, wk, bk, wv, bv, w_in, b_in, wo, bo)


if __name__ == "__main__":
    key = jax.random.PRNGKey(0)
    k_x, k_p = jax.random.split(key)

    # Small shapes consistent with MHAblock: seq=8, batch=2, feature_dim=5,
    # embed_dim=128, num_heads=8 (PyTorch layout: [seq, batch, feature]).
    L, B, F = 8, 2, 5
    E, H = 128, 8

    x = jax.random.normal(k_x, (L, B, F), dtype=jnp.float32)
    params = init_params(k_p, embed_dim=E, feature_dim=F)
    prepped = prepare_params(params, num_heads=H)   # one-time weight pre-layout

    out = jax.block_until_ready(mha_forward(x, prepped, num_heads=H))
    ref = jax.block_until_ready(reference_forward(x, params, num_heads=H))

    assert out.shape == (L, B, E), out.shape
    assert bool(jnp.all(jnp.isfinite(out)))
    assert bool(jnp.allclose(out, ref, rtol=1e-3, atol=1e-3)), (
        float(jnp.max(jnp.abs(out - ref))))

    print("KERNEL_OK")
</pallas_src>

<mosaic_0001>
module attributes {stable_mosaic.version = 11 : i64} {
  func.func @_mha_kernel(%arg0: i32, %arg1: memref<1x8x5xf32, #tpu.memory_space<vmem>>, %arg2: memref<5x384xf32, #tpu.memory_space<vmem>>, %arg3: memref<1x384xf32, #tpu.memory_space<vmem>>, %arg4: memref<128x128xf32, #tpu.memory_space<vmem>>, %arg5: memref<1x128xf32, #tpu.memory_space<vmem>>, %arg6: memref<1x8x128xf32, #tpu.memory_space<vmem>>) attributes {dimension_semantics = [#tpu.dimension_semantics<parallel>], iteration_bounds = array<i64: 2>, scalar_prefetch = 0 : i64, scratch_operands = 0 : i64, tpu.core_type = #tpu.core_type<tc>, window_params = [{transform_indices = @transform_0, window_bounds = array<i64: 1, 8, 5>}, {pipeline_mode = #tpu.pipeline_mode<synchronous>, transform_indices = @transform_1, window_bounds = array<i64: 5, 384>}, {pipeline_mode = #tpu.pipeline_mode<synchronous>, transform_indices = @transform_2, window_bounds = array<i64: 1, 384>}, {pipeline_mode = #tpu.pipeline_mode<synchronous>, transform_indices = @transform_3, window_bounds = array<i64: 128, 128>}, {pipeline_mode = #tpu.pipeline_mode<synchronous>, transform_indices = @transform_4, window_bounds = array<i64: 1, 128>}, {transform_indices = @transform_5, window_bounds = array<i64: 1, 8, 128>}]} {
    %c0 = arith.constant 0 : index
    %c0_0 = arith.constant 0 : index
    %c0_1 = arith.constant 0 : index
    %0 = vector.load %arg1[%c0, %c0_0, %c0_1] : memref<1x8x5xf32, #tpu.memory_space<vmem>>, vector<1x8x5xf32>
    %1 = vector.shape_cast %0 : vector<1x8x5xf32> to vector<8x5xf32>
    %c0_2 = arith.constant 0 : index
    %c0_3 = arith.constant 0 : index
    %2 = vector.load %arg2[%c0_2, %c0_3] : memref<5x384xf32, #tpu.memory_space<vmem>>, vector<5x384xf32>
    %cst = arith.constant dense<0.000000e+00> : vector<8x384xf32>
    %3 = tpu.matmul %1, %2, %cst {dimension_numbers = #tpu.dot_dimension_numbers<[1], [0], [0], [1], [0, 0, 1, 1], [], []>} : vector<8x5xf32>, vector<5x384xf32>, vector<8x384xf32> -> vector<8x384xf32>
    %c0_4 = arith.constant 0 : index
    %c0_5 = arith.constant 0 : index
    %4 = vector.load %arg3[%c0_4, %c0_5] : memref<1x384xf32, #tpu.memory_space<vmem>>, vector<1x384xf32>
    %5 = vector.broadcast %4 : vector<1x384xf32> to vector<8x384xf32>
    %6 = arith.addf %3, %5 : vector<8x384xf32>
    %7 = vector.extract_strided_slice %6 {offsets = [0, 0], sizes = [8, 128], strides = [1, 1]} : vector<8x384xf32> to vector<8x128xf32>
    %8 = vector.extract_strided_slice %6 {offsets = [0, 128], sizes = [8, 128], strides = [1, 1]} : vector<8x384xf32> to vector<8x128xf32>
    %9 = vector.extract_strided_slice %6 {offsets = [0, 256], sizes = [8, 128], strides = [1, 1]} : vector<8x384xf32> to vector<8x128xf32>
    %10 = vector.extract_strided_slice %7 {offsets = [0, 0], sizes = [8, 16], strides = [1, 1]} : vector<8x128xf32> to vector<8x16xf32>
    %11 = vector.extract_strided_slice %8 {offsets = [0, 0], sizes = [8, 16], strides = [1, 1]} : vector<8x128xf32> to vector<8x16xf32>
    %12 = vector.extract_strided_slice %9 {offsets = [0, 0], sizes = [8, 16], strides = [1, 1]} : vector<8x128xf32> to vector<8x16xf32>
    %cst_6 = arith.constant dense<0.000000e+00> : vector<8x8xf32>
    %13 = tpu.matmul %10, %11, %cst_6 {dimension_numbers = #tpu.dot_dimension_numbers<[1], [1], [0], [0], [0, 0, 1, 0], [], []>} : vector<8x16xf32>, vector<8x16xf32>, vector<8x8xf32> -> vector<8x8xf32>
    %cst_7 = arith.constant dense<0xFF800000> : vector<8xf32>
    %14 = vector.multi_reduction <maximumf>, %13, %cst_7 [1] : vector<8x8xf32> to vector<8xf32>
    %15 = vector.shape_cast %14 : vector<8xf32> to vector<8x1xf32>
    %16 = vector.broadcast %15 : vector<8x1xf32> to vector<8x8xf32>
    %17 = arith.subf %13, %16 : vector<8x8xf32>
    %18 = math.exp %17 : vector<8x8xf32>
    %cst_8 = arith.constant dense<0.000000e+00> : vector<8xf32>
    %19 = vector.multi_reduction <add>, %18, %cst_8 [1] : vector<8x8xf32> to vector<8xf32>
    %20 = vector.shape_cast %19 : vector<8xf32> to vector<8x1xf32>
    %21 = vector.broadcast %20 : vector<8x1xf32> to vector<8x8xf32>
    %22 = arith.divf %18, %21 : vector<8x8xf32>
    %cst_9 = arith.constant dense<0.000000e+00> : vector<8x16xf32>
    %23 = tpu.matmul %22, %12, %cst_9 {dimension_numbers = #tpu.dot_dimension_numbers<[1], [0], [0], [1], [0, 0, 1, 1], [], []>} : vector<8x8xf32>, vector<8x16xf32>, vector<8x16xf32> -> vector<8x16xf32>
    %24 = vector.extract_strided_slice %7 {offsets = [0, 16], sizes = [8, 16], strides = [1, 1]} : vector<8x128xf32> to vector<8x16xf32>
    %25 = vector.extract_strided_slice %8 {offsets = [0, 16], sizes = [8, 16], strides = [1, 1]} : vector<8x128xf32> to vector<8x16xf32>
    %26 = vector.extract_strided_slice %9 {offsets = [0, 16], sizes = [8, 16], strides = [1, 1]} : vector<8x128xf32> to vector<8x16xf32>
    %cst_10 = arith.constant dense<0.000000e+00> : vector<8x8xf32>
    %27 = tpu.matmul %24, %25, %cst_10 {dimension_numbers = #tpu.dot_dimension_numbers<[1], [1], [0], [0], [0, 0, 1, 0], [], []>} : vector<8x16xf32>, vector<8x16xf32>, vector<8x8xf32> -> vector<8x8xf32>
    %cst_11 = arith.constant dense<0xFF800000> : vector<8xf32>
    %28 = vector.multi_reduction <maximumf>, %27, %cst_11 [1] : vector<8x8xf32> to vector<8xf32>
    %29 = vector.shape_cast %28 : vector<8xf32> to vector<8x1xf32>
    %30 = vector.broadcast %29 : vector<8x1xf32> to vector<8x8xf32>
    %31 = arith.subf %27, %30 : vector<8x8xf32>
    %32 = math.exp %31 : vector<8x8xf32>
    %cst_12 = arith.constant dense<0.000000e+00> : vector<8xf32>
    %33 = vector.multi_reduction <add>, %32, %cst_12 [1] : vector<8x8xf32> to vector<8xf32>
    %34 = vector.shape_cast %33 : vector<8xf32> to vector<8x1xf32>
    %35 = vector.broadcast %34 : vector<8x1xf32> to vector<8x8xf32>
    %36 = arith.divf %32, %35 : vector<8x8xf32>
    %cst_13 = arith.constant dense<0.000000e+00> : vector<8x16xf32>
    %37 = tpu.matmul %36, %26, %cst_13 {dimension_numbers = #tpu.dot_dimension_numbers<[1], [0], [0], [1], [0, 0, 1, 1], [], []>} : vector<8x8xf32>, vector<8x16xf32>, vector<8x16xf32> -> vector<8x16xf32>
    %38 = vector.extract_strided_slice %7 {offsets = [0, 32], sizes = [8, 16], strides = [1, 1]} : vector<8x128xf32> to vector<8x16xf32>
    %39 = vector.extract_strided_slice %8 {offsets = [0, 32], sizes = [8, 16], strides = [1, 1]} : vector<8x128xf32> to vector<8x16xf32>
    %40 = vector.extract_strided_slice %9 {offsets = [0, 32], sizes = [8, 16], strides = [1, 1]} : vector<8x128xf32> to vector<8x16xf32>
    %cst_14 = arith.constant dense<0.000000e+00> : vector<8x8xf32>
    %41 = tpu.matmul %38, %39, %cst_14 {dimension_numbers = #tpu.dot_dimension_numbers<[1], [1], [0], [0], [0, 0, 1, 0], [], []>} : vector<8x16xf32>, vector<8x16xf32>, vector<8x8xf32> -> vector<8x8xf32>
    %cst_15 = arith.constant dense<0xFF800000> : vector<8xf32>
    %42 = vector.multi_reduction <maximumf>, %41, %cst_15 [1] : vector<8x8xf32> to vector<8xf32>
    %43 = vector.shape_cast %42 : vector<8xf32> to vector<8x1xf32>
    %44 = vector.broadcast %43 : vector<8x1xf32> to vector<8x8xf32>
    %45 = arith.subf %41, %44 : vector<8x8xf32>
    %46 = math.exp %45 : vector<8x8xf32>
    %cst_16 = arith.constant dense<0.000000e+00> : vector<8xf32>
    %47 = vector.multi_reduction <add>, %46, %cst_16 [1] : vector<8x8xf32> to vector<8xf32>
    %48 = vector.shape_cast %47 : vector<8xf32> to vector<8x1xf32>
    %49 = vector.broadcast %48 : vector<8x1xf32> to vector<8x8xf32>
    %50 = arith.divf %46, %49 : vector<8x8xf32>
    %cst_17 = arith.constant dense<0.000000e+00> : vector<8x16xf32>
    %51 = tpu.matmul %50, %40, %cst_17 {dimension_numbers = #tpu.dot_dimension_numbers<[1], [0], [0], [1], [0, 0, 1, 1], [], []>} : vector<8x8xf32>, vector<8x16xf32>, vector<8x16xf32> -> vector<8x16xf32>
    %52 = vector.extract_strided_slice %7 {offsets = [0, 48], sizes = [8, 16], strides = [1, 1]} : vector<8x128xf32> to vector<8x16xf32>
    %53 = vector.extract_strided_slice %8 {offsets = [0, 48], sizes = [8, 16], strides = [1, 1]} : vector<8x128xf32> to vector<8x16xf32>
    %54 = vector.extract_strided_slice %9 {offsets = [0, 48], sizes = [8, 16], strides = [1, 1]} : vector<8x128xf32> to vector<8x16xf32>
    %cst_18 = arith.constant dense<0.000000e+00> : vector<8x8xf32>
    %55 = tpu.matmul %52, %53, %cst_18 {dimension_numbers = #tpu.dot_dimension_numbers<[1], [1], [0], [0], [0, 0, 1, 0], [], []>} : vector<8x16xf32>, vector<8x16xf32>, vector<8x8xf32> -> vector<8x8xf32>
    %cst_19 = arith.constant dense<0xFF800000> : vector<8xf32>
    %56 = vector.multi_reduction <maximumf>, %55, %cst_19 [1] : vector<8x8xf32> to vector<8xf32>
    %57 = vector.shape_cast %56 : vector<8xf32> to vector<8x1xf32>
    %58 = vector.broadcast %57 : vector<8x1xf32> to vector<8x8xf32>
    %59 = arith.subf %55, %58 : vector<8x8xf32>
    %60 = math.exp %59 : vector<8x8xf32>
    %cst_20 = arith.constant dense<0.000000e+00> : vector<8xf32>
    %61 = vector.multi_reduction <add>, %60, %cst_20 [1] : vector<8x8xf32> to vector<8xf32>
    %62 = vector.shape_cast %61 : vector<8xf32> to vector<8x1xf32>
    %63 = vector.broadcast %62 : vector<8x1xf32> to vector<8x8xf32>
    %64 = arith.divf %60, %63 : vector<8x8xf32>
    %cst_21 = arith.constant dense<0.000000e+00> : vector<8x16xf32>
    %65 = tpu.matmul %64, %54, %cst_21 {dimension_numbers = #tpu.dot_dimension_numbers<[1], [0], [0], [1], [0, 0, 1, 1], [], []>} : vector<8x8xf32>, vector<8x16xf32>, vector<8x16xf32> -> vector<8x16xf32>
    %66 = vector.extract_strided_slice %7 {offsets = [0, 64], sizes = [8, 16], strides = [1, 1]} : vector<8x128xf32> to vector<8x16xf32>
    %67 = vector.extract_strided_slice %8 {offsets = [0, 64], sizes = [8, 16], strides = [1, 1]} : vector<8x128xf32> to vector<8x16xf32>
    %68 = vector.extract_strided_slice %9 {offsets = [0, 64], sizes = [8, 16], strides = [1, 1]} : vector<8x128xf32> to vector<8x16xf32>
    %cst_22 = arith.constant dense<0.000000e+00> : vector<8x8xf32>
    %69 = tpu.matmul %66, %67, %cst_22 {dimension_numbers = #tpu.dot_dimension_numbers<[1], [1], [0], [0], [0, 0, 1, 0], [], []>} : vector<8x16xf32>, vector<8x16xf32>, vector<8x8xf32> -> vector<8x8xf32>
    %cst_23 = arith.constant dense<0xFF800000> : vector<8xf32>
    %70 = vector.multi_reduction <maximumf>, %69, %cst_23 [1] : vector<8x8xf32> to vector<8xf32>
    %71 = vector.shape_cast %70 : vector<8xf32> to vector<8x1xf32>
    %72 = vector.broadcast %71 : vector<8x1xf32> to vector<8x8xf32>
    %73 = arith.subf %69, %72 : vector<8x8xf32>
    %74 = math.exp %73 : vector<8x8xf32>
    %cst_24 = arith.constant dense<0.000000e+00> : vector<8xf32>
    %75 = vector.multi_reduction <add>, %74, %cst_24 [1] : vector<8x8xf32> to vector<8xf32>
    %76 = vector.shape_cast %75 : vector<8xf32> to vector<8x1xf32>
    %77 = vector.broadcast %76 : vector<8x1xf32> to vector<8x8xf32>
    %78 = arith.divf %74, %77 : vector<8x8xf32>
    %cst_25 = arith.constant dense<0.000000e+00> : vector<8x16xf32>
    %79 = tpu.matmul %78, %68, %cst_25 {dimension_numbers = #tpu.dot_dimension_numbers<[1], [0], [0], [1], [0, 0, 1, 1], [], []>} : vector<8x8xf32>, vector<8x16xf32>, vector<8x16xf32> -> vector<8x16xf32>
    %80 = vector.extract_strided_slice %7 {offsets = [0, 80], sizes = [8, 16], strides = [1, 1]} : vector<8x128xf32> to vector<8x16xf32>
    %81 = vector.extract_strided_slice %8 {offsets = [0, 80], sizes = [8, 16], strides = [1, 1]} : vector<8x128xf32> to vector<8x16xf32>
    %82 = vector.extract_strided_slice %9 {offsets = [0, 80], sizes = [8, 16], strides = [1, 1]} : vector<8x128xf32> to vector<8x16xf32>
    %cst_26 = arith.constant dense<0.000000e+00> : vector<8x8xf32>
    %83 = tpu.matmul %80, %81, %cst_26 {dimension_numbers = #tpu.dot_dimension_numbers<[1], [1], [0], [0], [0, 0, 1, 0], [], []>} : vector<8x16xf32>, vector<8x16xf32>, vector<8x8xf32> -> vector<8x8xf32>
    %cst_27 = arith.constant dense<0xFF800000> : vector<8xf32>
    %84 = vector.multi_reduction <maximumf>, %83, %cst_27 [1] : vector<8x8xf32> to vector<8xf32>
    %85 = vector.shape_cast %84 : vector<8xf32> to vector<8x1xf32>
    %86 = vector.broadcast %85 : vector<8x1xf32> to vector<8x8xf32>
    %87 = arith.subf %83, %86 : vector<8x8xf32>
    %88 = math.exp %87 : vector<8x8xf32>
    %cst_28 = arith.constant dense<0.000000e+00> : vector<8xf32>
    %89 = vector.multi_reduction <add>, %88, %cst_28 [1] : vector<8x8xf32> to vector<8xf32>
    %90 = vector.shape_cast %89 : vector<8xf32> to vector<8x1xf32>
    %91 = vector.broadcast %90 : vector<8x1xf32> to vector<8x8xf32>
    %92 = arith.divf %88, %91 : vector<8x8xf32>
    %cst_29 = arith.constant dense<0.000000e+00> : vector<8x16xf32>
    %93 = tpu.matmul %92, %82, %cst_29 {dimension_numbers = #tpu.dot_dimension_numbers<[1], [0], [0], [1], [0, 0, 1, 1], [], []>} : vector<8x8xf32>, vector<8x16xf32>, vector<8x16xf32> -> vector<8x16xf32>
    %94 = vector.extract_strided_slice %7 {offsets = [0, 96], sizes = [8, 16], strides = [1, 1]} : vector<8x128xf32> to vector<8x16xf32>
    %95 = vector.extract_strided_slice %8 {offsets = [0, 96], sizes = [8, 16], strides = [1, 1]} : vector<8x128xf32> to vector<8x16xf32>
    %96 = vector.extract_strided_slice %9 {offsets = [0, 96], sizes = [8, 16], strides = [1, 1]} : vector<8x128xf32> to vector<8x16xf32>
    %cst_30 = arith.constant dense<0.000000e+00> : vector<8x8xf32>
    %97 = tpu.matmul %94, %95, %cst_30 {dimension_numbers = #tpu.dot_dimension_numbers<[1], [1], [0], [0], [0, 0, 1, 0], [], []>} : vector<8x16xf32>, vector<8x16xf32>, vector<8x8xf32> -> vector<8x8xf32>
    %cst_31 = arith.constant dense<0xFF800000> : vector<8xf32>
    %98 = vector.multi_reduction <maximumf>, %97, %cst_31 [1] : vector<8x8xf32> to vector<8xf32>
    %99 = vector.shape_cast %98 : vector<8xf32> to vector<8x1xf32>
    %100 = vector.broadcast %99 : vector<8x1xf32> to vector<8x8xf32>
    %101 = arith.subf %97, %100 : vector<8x8xf32>
    %102 = math.exp %101 : vector<8x8xf32>
    %cst_32 = arith.constant dense<0.000000e+00> : vector<8xf32>
    %103 = vector.multi_reduction <add>, %102, %cst_32 [1] : vector<8x8xf32> to vector<8xf32>
    %104 = vector.shape_cast %103 : vector<8xf32> to vector<8x1xf32>
    %105 = vector.broadcast %104 : vector<8x1xf32> to vector<8x8xf32>
    %106 = arith.divf %102, %105 : vector<8x8xf32>
    %cst_33 = arith.constant dense<0.000000e+00> : vector<8x16xf32>
    %107 = tpu.matmul %106, %96, %cst_33 {dimension_numbers = #tpu.dot_dimension_numbers<[1], [0], [0], [1], [0, 0, 1, 1], [], []>} : vector<8x8xf32>, vector<8x16xf32>, vector<8x16xf32> -> vector<8x16xf32>
    %108 = vector.extract_strided_slice %7 {offsets = [0, 112], sizes = [8, 16], strides = [1, 1]} : vector<8x128xf32> to vector<8x16xf32>
    %109 = vector.extract_strided_slice %8 {offsets = [0, 112], sizes = [8, 16], strides = [1, 1]} : vector<8x128xf32> to vector<8x16xf32>
    %110 = vector.extract_strided_slice %9 {offsets = [0, 112], sizes = [8, 16], strides = [1, 1]} : vector<8x128xf32> to vector<8x16xf32>
    %cst_34 = arith.constant dense<0.000000e+00> : vector<8x8xf32>
    %111 = tpu.matmul %108, %109, %cst_34 {dimension_numbers = #tpu.dot_dimension_numbers<[1], [1], [0], [0], [0, 0, 1, 0], [], []>} : vector<8x16xf32>, vector<8x16xf32>, vector<8x8xf32> -> vector<8x8xf32>
    %cst_35 = arith.constant dense<0xFF800000> : vector<8xf32>
    %112 = vector.multi_reduction <maximumf>, %111, %cst_35 [1] : vector<8x8xf32> to vector<8xf32>
    %113 = vector.shape_cast %112 : vector<8xf32> to vector<8x1xf32>
    %114 = vector.broadcast %113 : vector<8x1xf32> to vector<8x8xf32>
    %115 = arith.subf %111, %114 : vector<8x8xf32>
    %116 = math.exp %115 : vector<8x8xf32>
    %cst_36 = arith.constant dense<0.000000e+00> : vector<8xf32>
    %117 = vector.multi_reduction <add>, %116, %cst_36 [1] : vector<8x8xf32> to vector<8xf32>
    %118 = vector.shape_cast %117 : vector<8xf32> to vector<8x1xf32>
    %119 = vector.broadcast %118 : vector<8x1xf32> to vector<8x8xf32>
    %120 = arith.divf %116, %119 : vector<8x8xf32>
    %cst_37 = arith.constant dense<0.000000e+00> : vector<8x16xf32>
    %121 = tpu.matmul %120, %110, %cst_37 {dimension_numbers = #tpu.dot_dimension_numbers<[1], [0], [0], [1], [0, 0, 1, 1], [], []>} : vector<8x8xf32>, vector<8x16xf32>, vector<8x16xf32> -> vector<8x16xf32>
    %122 = tpu.concatenate %23, %37, %51, %65, %79, %93, %107, %121 in 1 : vector<8x16xf32>, vector<8x16xf32>, vector<8x16xf32>, vector<8x16xf32>, vector<8x16xf32>, vector<8x16xf32>, vector<8x16xf32>, vector<8x16xf32> -> vector<8x128xf32>
    %c0_38 = arith.constant 0 : index
    %c0_39 = arith.constant 0 : index
    %123 = vector.load %arg4[%c0_38, %c0_39] : memref<128x128xf32, #tpu.memory_space<vmem>>, vector<128x128xf32>
    %cst_40 = arith.constant dense<0.000000e+00> : vector<8x128xf32>
    %124 = tpu.matmul %122, %123, %cst_40 {dimension_numbers = #tpu.dot_dimension_numbers<[1], [0], [0], [1], [0, 0, 1, 1], [], []>} : vector<8x128xf32>, vector<128x128xf32>, vector<8x128xf32> -> vector<8x128xf32>
    %c0_41 = arith.constant 0 : index
    %c0_42 = arith.constant 0 : index
    %125 = vector.load %arg5[%c0_41, %c0_42] : memref<1x128xf32, #tpu.memory_space<vmem>>, vector<1x128xf32>
    %126 = vector.broadcast %125 : vector<1x128xf32> to vector<8x128xf32>
    %127 = arith.addf %124, %126 : vector<8x128xf32>
    %c0_43 = arith.constant 0 : index
    %c0_44 = arith.constant 0 : index
    %c0_45 = arith.constant 0 : index
    %128 = vector.load %arg6[%c0_43, %c0_44, %c0_45] : memref<1x8x128xf32, #tpu.memory_space<vmem>>, vector<1x8x128xf32>
    %129 = vector.shape_cast %128 : vector<1x8x128xf32> to vector<8x128xf32>
    %130 = vector.shape_cast %127 : vector<8x128xf32> to vector<1x8x128xf32>
    tpu.vector_store %arg6[%c0_43, %c0_44, %c0_45], %130 {strides = array<i32>} : memref<1x8x128xf32, #tpu.memory_space<vmem>>, vector<1x8x128xf32>,
    return
  }
  func.func @transform_0(%arg0: i32) -> (i32, i32, i32) {
    %c0_i32 = arith.constant 0 : i32
    %c0_i32_0 = arith.constant 0 : i32
    %c0_i32_1 = arith.constant 0 : i32
    return %arg0, %c0_i32, %c0_i32_0 : i32, i32, i32
  }
  func.func @transform_1(%arg0: i32) -> (i32, i32) {
    %c0_i32 = arith.constant 0 : i32
    %c0_i32_0 = arith.constant 0 : i32
    %c0_i32_1 = arith.constant 0 : i32
    return %c0_i32, %c0_i32_0 : i32, i32
  }
  func.func @transform_2(%arg0: i32) -> (i32, i32) {
    %c0_i32 = arith.constant 0 : i32
    %c0_i32_0 = arith.constant 0 : i32
    %c0_i32_1 = arith.constant 0 : i32
    return %c0_i32, %c0_i32_0 : i32, i32
  }
  func.func @transform_3(%arg0: i32) -> (i32, i32) {
    %c0_i32 = arith.constant 0 : i32
    %c0_i32_0 = arith.constant 0 : i32
    %c0_i32_1 = arith.constant 0 : i32
    return %c0_i32, %c0_i32_0 : i32, i32
  }
  func.func @transform_4(%arg0: i32) -> (i32, i32) {
    %c0_i32 = arith.constant 0 : i32
    %c0_i32_0 = arith.constant 0 : i32
    %c0_i32_1 = arith.constant 0 : i32
    return %c0_i32, %c0_i32_0 : i32, i32
  }
  func.func @transform_5(%arg0: i32) -> (i32, i32, i32) {
    %c0_i32 = arith.constant 0 : i32
    %c0_i32_0 = arith.constant 0 : i32
    %c0_i32_1 = arith.constant 0 : i32
    return %arg0, %c0_i32, %c0_i32_0 : i32, i32, i32
  }
}

</mosaic_0001>

<bundles_post_ra>
// kernel: mha_forward.1
= control target key start
LH: loop header
LB: loop body
LE: loop exit
PB: predicated region body
PF: predicated region fallthrough
CT: control target
= control target key end

     0   :  { %10 = vsyncpa [#allocation3], 0  ;;  %s1276_s18 = smov 0   ;;  %s1450_s0 = inlined_call_operand.vmem [shape: f32[2,8,5], index: 0, kind: input, shape index: {}]   ;;  %s1451_s1 = inlined_call_operand.vmem [shape: f32[5,384], index: 1, kind: input, shape index: {}]   ;;  %s1452_s2 = inlined_call_operand.vmem [shape: f32[1,384], index: 2, kind: input, shape index: {}]   ;;  %s1453_s3 = inlined_call_operand.hbm [shape: f32[128,128], index: 3, kind: input, shape index: {}]   ;;  %s1454_s4 = inlined_call_operand.vmem [shape: f32[1,128], index: 4, kind: input, shape index: {}]   ;;  %s1455_s5 = inlined_call_operand.vmem [shape: f32[2,8,128], index: 5, kind: output, shape index: {}]  }
   0x1 LB: > { %s174_s21 = sshll.u32 %s1453_s3, 4  ;;  %s1092_s22 = sadd.s32 4294967295, %s1234_s18   ;;  %s1234_s18 = sphi %s1276_s18, %s16_s18   ;;  %s175_s21 = int_to_ptr.hbm [resolvable:$true] %s174_s21 }
   0x2   : > { %p1094_p0 = scmp.ge.s32.totalorder %s1234_s18, 1  ;;  %p157_p1 = scmp.lt.s32.totalorder %s1234_s18, 3 }
   0x3   : > { %p1141_p2 = scmp.eq.s32.totalorder %s1092_s22, 0  ;;  %s1236_s23 = smov [#allocation2]  }
   0x4   : > { %p158_p3 = pnand %p1094_p0, %p157_p1  ;;  %s176_s24 = sshll.u32 %s1236_s23, 4  ;;  %s177_s24 = int_to_ptr.vmem [resolvable:$true] %s176_s24 }
   0x5   : > { %s1237_s25 = smov 128   ;;  %s1238_s26 = smov 8  }
   0x6   : > { %p1137_p4 = pneg %p158_p3  ;;  %202 = sbr.rel (%p158_p3) target bundleno = 1466 (0x5ba), region = 40 }
   0x8   : > { %p1138_p5 = pnand %p1141_p2, %p1137_p4 }
   0xa   : > { %1140 = dma.hbm_to_vmem [thread:$0]  (!%p1138_p5), %s175_s21, 2048, %s177_s24, [#allocation3], %s1237_s25, %s1237_s25, %s1238_s26  }
   0xb   : > { %1229 = dma.done.wait (%p1141_p2), [#allocation3], 2048  }
   0xc   : > { %1231 = vsyncadd (%p1141_p2), [#allocation3], 4294965248  ;;  %p229_p6 = scmp.lt.s32.totalorder %s1092_s22, 1  ;;  %vm253_vm0 = vcmask 1044480   ;;  %vm249_vm1 = vcmask 39936   ;;  %vm323_vm2 = vcmask 130048  }
   0xd   : > { %v239_v0 = vld [vmem:[%s1451_s1 + $0x8] sm:$0x1f]  ;;  %v238_v2 = vld [vmem:[%s1451_s1] sm:$0x1f]  ;;  %s1239_s12 = smov 80   ;;  %s1240_s13 = smov 96  }
   0xe   : > { %s1457_s22 = smov (!%p229_p6, %s1092_s22), 1  ;;  %1103 = vmatpush.msk.msra.mxu1 %vm253_vm0, %v239_v0  ;;  %1101 = vmatpush.msk.msra.mxu0 %vm253_vm0, %v238_v2  ;;  %v241_v3 = vld [vmem:[%s1452_s2] sm:$0x7]  ;;  %s1241_s14 = smov 112   ;;  %v240_v12 = vld [vmem:[%s1451_s1 + $0x10] sm:$0x1f] }
   0xf   : > { %s1099_s27 = sshll.u32 %s1457_s22, 3  ;;  %v244_v4 = vperm.slane %v241_v3, 1  ;;  %v243_v5 = vperm.slane %v241_v3, 0  ;;  %s1242_s15 = smov 64   ;;  %1105 = vmatpush.msk.msra.mxu2 %vm253_vm0, %v240_v12  ;;  %v245_v19 = vperm.slane %v241_v3, 2  ;;  %vm350_vm3 = vcmask 64512  }
  0x10   : > { %s232_s30 = scalar_lea.vmem %s1450_s0, %s1099_s27  ;;  %s1243_s16 = smov 32  }
  0x11   : > { %v237_v1 = vld [vmem:[%s232_s30] sm:$0xff]  ;;  %s1244_s20 = smov 48   ;;  %s1245_s21 = smov 16  }
  0x12   : > { %1104 = vmatmul.msk.f32.vlgmr.msra.gmra.mxu1 %vm249_vm1, %v237_v1  ;;  %1102 = vmatmul.msk.f32.vlgmr.msra.gmra.mxu0 %vm249_vm1, %v237_v1  ;;  %s236_s28 = scalar_lea.vmem %s1455_s5, %s1099_s27 }
  0x13   : > { %1106 = vmatmul.msk.f32.vlgmr.msra.gmra.mxu2 %vm249_vm1, %v237_v1 }
  0x8f   : > { %v300_v6 = vpop.f32.mrf.mxu1  ;;  %v280_v7 = vpop.f32.mrf.mxu0 }
  0x90   : > { %v301_v8 = vadd.f32 %v300_v6, %v244_v4  ;;  %v1310_v9 = vadd.f32 %v280_v7, %v243_v5 }
  0x92   : > { %557 = vrot.lane.b32.xlu2 %v301_v8, %s1239_s12  ;;  %479 = vrot.lane.b32.xlu1 %v301_v8, %s1240_s13 }
  0x93   : > { %400 = vrot.lane.b32.xlu0 %v301_v8, %s1241_s14  ;;  %1107 = vmatpush.xpose.msk.msrb.mxu0 %vm323_vm2, %v301_v8 }
  0x96   : > { %1108 = vmatmul.msk.f32.vlgmr.msrb.gmra.mxu0 %vm323_vm2, %v1310_v9  ;;  %v320_v20 = vpop.f32.mrf.mxu2 }
  0x97   : > { %v1338_v21 = vadd.f32 %v320_v20, %v245_v19 }
  0x99   : > { %393 = vmatpush.msra.mxu0 %v1338_v21 }
  0x9a   : > { %555 = vrot.lane.b32.xlu2 %v1310_v9, %s1239_s12  ;;  %477 = vrot.lane.b32.xlu1 %v1310_v9, %s1240_s13 }
  0x9b   : > { %398 = vrot.lane.b32.xlu0 %v1310_v9, %s1241_s14 }
  0xa2   : > { %635 = vrot.lane.b32.xlu2 %v301_v8, %s1242_s15 }
  0xaa   : > { %791 = vrot.lane.b32.xlu2 %v301_v8, %s1243_s16 }
  0xec   : > { %v558_v10 = vpop.permute.xlu2 %557 }
  0xf4   : > { %v556_v11 = vpop.permute.xlu2 %555 }
  0xfc   : > { %v1329_v13 = vpop.permute.xlu2 %635 }
 0x104   : > { %v480_v14 = vpop.permute.xlu1 %479  ;;  %v792_v15 = vpop.permute.xlu2 %791 }
 0x105   : > { %v401_v16 = vpop.permute.xlu0 %400  ;;  %1125 = vmatpush.xpose.msk.msra.mxu3 %vm323_vm2, %v792_v15 }
 0x106   : > { %1110 = vmatpush.xpose.msk.msrb.mxu1 %vm323_vm2, %v401_v16 }
 0x10a   : > { %1113 = vmatpush.xpose.msk.msra.mxu1 %vm323_vm2, %v480_v14 }
 0x10c   : > { %v478_v18 = vpop.permute.xlu1 %477 }
 0x10d   : > { %v399_v17 = vpop.permute.xlu0 %398 }
 0x10e   : > { %1111 = vmatmul.msk.f32.vlgmr.msrb.gmra.mxu1 %vm323_vm2, %v399_v17 }
 0x10f   : > { %1116 = vmatpush.xpose.msk.msrb.mxu1 %vm323_vm2, %v558_v10 }
 0x113   : > { %v347_v28 = vpop.f32.mrf.mxu0 }
 0x114   : > { %v351_v29 = vsel %vm350_vm3, %v347_v28, -inf }
 0x116   : > { %1114 = vmatmul.msk.f32.vlgmr.msra.gmra.mxu1 %vm323_vm2, %v478_v18 }
 0x11e   : > { %1117 = vmatmul.msk.f32.vlgmr.msrb.gmra.mxu1 %vm323_vm2, %v556_v11 }
 0x18b   : > { %v423_v22 = vpop.f32.mrf.mxu1 }
 0x18c   : > { %v426_v23 = vsel %vm350_vm3, %v423_v22, -inf }
 0x18d   : > { %427 = vmax.xlane.f32.xlu0 %v426_v23 }
 0x193   : > { %v1342_v24 = vpop.f32.mrf.mxu1 }
 0x194   : > { %v505_v27 = vsel %vm350_vm3, %v1342_v24, -inf }
 0x19b   : > { %v580_v25 = vpop.f32.mrf.mxu1 }
 0x19c   : > { %v583_v26 = vsel %vm350_vm3, %v580_v25, -inf }
 0x19d   : > { %584 = vmax.xlane.f32.xlu1 %v583_v26 }
 0x1a1   : > { %451 = vrot.lane.b32.xlu0 %v1338_v21, %s1241_s14 }
 0x1a9   : > { %713 = vrot.lane.b32.xlu0 %v301_v8, %s1244_s20 }
 0x1b1   : > { %711 = vrot.lane.b32.xlu0 %v1310_v9, %s1244_s20 }
 0x1b6   : > { %607 = vrot.lane.b32.xlu1 %v1338_v21, %s1239_s12 }
 0x1b9   : > { %789 = vrot.lane.b32.xlu0 %v1310_v9, %s1243_s16 }
 0x1be   : > { %633 = vrot.lane.b32.xlu1 %v1310_v9, %s1242_s15 }
 0x1c6   : > { %869 = vrot.lane.b32.xlu1 %v301_v8, %s1245_s21 }
 0x1e3   : > { %506 = vmax.xlane.f32.xlu0 %v505_v27 }
 0x1f0   : > { %352 = vmax.xlane.f32.xlu1 %v351_v29 }
 0x200   : > { %v428_v30 = vpop.xlane.xlu0 %427 }
 0x201   : > { %v429_v31 = vsub.f32 %v423_v22, %v428_v30 }
 0x203   : > { %v430_v32 = vmul.f32 1.442695, %v429_v31 }
 0x205   : > { %1162 = vpow2.f32 %v430_v32 }
 0x20b   : > { %v1163_v33 = vpop.eup %1162 }
 0x20c   : > { %v432_v34 = vsel %vm350_vm3, %v1163_v33, 0.0 }
 0x20d   : > { %433 = vadd.xlane.f32.xlu2 %v432_v34 }
 0x210   : > { %v585_v35 = vpop.xlane.xlu1 %584 }
 0x211   : > { %v586_v36 = vsub.f32 %v580_v25, %v585_v35 }
 0x213   : > { %v587_v37 = vmul.f32 1.442695, %v586_v36  ;;  %v452_v38 = vpop.permute.xlu0 %451 }
 0x214   : > { %472 = vmatpush.msrb.mxu2 %v452_v38 }
 0x215   : > { %1164 = vpow2.f32 %v587_v37 }
 0x21b   : > { %v1165_v39 = vpop.eup %1164  ;;  %v714_v40 = vpop.permute.xlu0 %713 }
 0x21c   : > { %1122 = vmatpush.xpose.msk.msra.mxu1 %vm323_vm2, %v714_v40  ;;  %v589_v41 = vsel %vm350_vm3, %v1165_v39, 0.0 }
 0x21d   : > { %590 = vadd.xlane.f32.xlu2 %v589_v41 }
 0x223   : > { %v712_v42 = vpop.permute.xlu0 %711 }
 0x224   : > { %1123 = vmatmul.msk.f32.vlgmr.msra.gmra.mxu1 %vm323_vm2, %v712_v42 }
 0x228   : > { %v608_v43 = vpop.permute.xlu1 %607 }
 0x229   : > { %628 = vmatpush.msra.mxu2 %v608_v43 }
 0x22b   : > { %v790_v44 = vpop.permute.xlu0 %789 }
 0x22c   : > { %1126 = vmatmul.msk.f32.vlgmr.msra.gmra.mxu3 %vm323_vm2, %v790_v44 }
 0x230   : > { %v634_v45 = vpop.permute.xlu1 %633 }
 0x235   : > { %867 = vrot.lane.b32.xlu2 %v1310_v9, %s1245_s21 }
 0x238   : > { %v870_v46 = vpop.permute.xlu1 %869 }
 0x239   : > { %1128 = vmatpush.xpose.msk.msrb.mxu1 %vm323_vm2, %v870_v46 }
 0x256   : > { %v507_v31 = vpop.xlane.xlu0 %506 }
 0x257   : > { %v508_v32 = vsub.f32 %v1342_v24, %v507_v31 }
 0x263   : > { %v353_v47 = vpop.xlane.xlu1 %352 }
 0x264   : > { %v354_v48 = vsub.f32 %v347_v28, %v353_v47 }
 0x266   : > { %v355_v49 = vmul.f32 1.442695, %v354_v48 }
 0x268   : > { %1166 = vpow2.f32 %v355_v49 }
 0x26e   : > { %v1368_v50 = vpop.eup %1166 }
 0x26f   : > { %v357_v51 = vsel %vm350_vm3, %v1368_v50, 0.0 }
 0x270   : > { %358 = vadd.xlane.f32.xlu1 %v357_v51 }
 0x280   : > { %v434_v52 = vpop.xlane.xlu2 %433 }
 0x281   : > { %1168 = vrcp.f32 %v434_v52  ;;  %v446_v57 = vand.u32 2147483648, %v434_v52  ;;  %v444_v58 = vand.u32 2147483647, %v434_v52  ;;  %vm440_vm5 = vweird.f32 %v434_v52 }
 0x283   : > { %v447_v60 = vor.u32 1.1754944e-38, %v446_v57  ;;  %vm445_vm7 = vcmp.eq.f32.partialorder %v444_v58, 8.507059e+37 }
 0x287   : > { %v1169_v53 = vpop.eup %1168 }
 0x288   : > { %v436_v54 = vmul.f32 %v1169_v53, %v434_v52  ;;  %vm441_vm4 = vweird.f32 %v1169_v53 }
 0x289   : > { %vm442_vm6 = vmor %vm440_vm5, %vm441_vm4 }
 0x28a   : > { %v437_v55 = vsub.f32 1.0, %v436_v54 }
 0x28c   : > { %v438_v56 = vmul.f32 %v1169_v53, %v437_v55 }
 0x28e   : > { %v439_v59 = vadd.f32 %v1169_v53, %v438_v56 }
 0x290   : > { %v591_v61 = vpop.xlane.xlu2 %590  ;;  %v443_v62 = vsel %vm442_vm6, %v1169_v53, %v439_v59 }
 0x291   : > { %1170 = vrcp.f32 %v591_v61  ;;  %v448_v63 = vsel %vm445_vm7, %v447_v60, %v443_v62  ;;  %v603_v5 = vand.u32 2147483648, %v591_v61  ;;  %v601_v7 = vand.u32 2147483647, %v591_v61 }
 0x292   : > { %v449_v0 = vmul.f32 %v1163_v33, %v448_v63  ;;  %vm597_vm9 = vweird.f32 %v591_v61  ;;  %v509_v33 = vmul.f32 1.442695, %v508_v32 }
 0x293   : > { %v604_v9 = vor.u32 1.1754944e-38, %v603_v5  ;;  %vm602_vm11 = vcmp.eq.f32.partialorder %v601_v7, 8.507059e+37 }
 0x294   : > { %1112 = vmatmul.msk.f32.vlgmr.msrb.gmra.mxu2 %vm350_vm3, %v449_v0 }
 0x295   : > { %1119 = vmatpush.xpose.msk.msrb.mxu2 %vm323_vm2, %v1329_v13 }
 0x297   : > { %v1171_v1 = vpop.eup %1170 }
 0x298   : > { %v593_v2 = vmul.f32 %v1171_v1, %v591_v61  ;;  %v868_v3 = vpop.permute.xlu2 %867  ;;  %vm598_vm8 = vweird.f32 %v1171_v1 }
 0x299   : > { %1129 = vmatmul.msk.f32.vlgmr.msrb.gmra.mxu1 %vm323_vm2, %v868_v3  ;;  %vm599_vm10 = vmor %vm597_vm9, %vm598_vm8 }
 0x29a   : > { %v594_v4 = vsub.f32 1.0, %v593_v2 }
 0x29c   : > { %v595_v6 = vmul.f32 %v1171_v1, %v594_v4 }
 0x29e   : > { %v596_v8 = vadd.f32 %v1171_v1, %v595_v6 }
 0x2a0   : > { %v600_v10 = vsel %vm599_vm10, %v1171_v1, %v596_v8 }
 0x2a1   : > { %v605_v11 = vsel %vm602_vm11, %v604_v9, %v600_v10  ;;  %v736_v12 = vpop.f32.mrf.mxu1 }
 0x2a2   : > { %v739_v13 = vsel %vm350_vm3, %v736_v12, -inf  ;;  %v606_v14 = vmul.f32 %v1165_v39, %v605_v11 }
 0x2a3   : > { %740 = vmax.xlane.f32.xlu2 %v739_v13 }
 0x2a4   : > { %1118 = vmatmul.msk.f32.vlgmr.msra.gmra.mxu2 %vm350_vm3, %v606_v14 }
 0x2ac   : > { %1120 = vmatmul.msk.f32.vlgmr.msrb.gmra.mxu2 %vm323_vm2, %v634_v45 }
 0x2af   : > { %v814_v15 = vpop.f32.mrf.mxu3 }
 0x2b0   : > { %v817_v16 = vsel %vm350_vm3, %v814_v15, -inf }
 0x2b1   : > { %818 = vmax.xlane.f32.xlu2 %v817_v16 }
 0x2e3   : > { %v359_v17 = vpop.xlane.xlu1 %358 }
 0x2e4   : > { %1172 = vrcp.f32 %v359_v17  ;;  %v371_v22 = vand.u32 2147483648, %v359_v17  ;;  %v369_v25 = vand.u32 2147483647, %v359_v17  ;;  %vm365_vm13 = vweird.f32 %v359_v17 }
 0x2e5   : > { %1174 = vpow2.f32 %v509_v33 }
 0x2e6   : > { %v372_v27 = vor.u32 1.1754944e-38, %v371_v22  ;;  %vm370_vm15 = vcmp.eq.f32.partialorder %v369_v25, 8.507059e+37 }
 0x2ea   : > { %v1173_v18 = vpop.eup %1172 }
 0x2eb   : > { %v361_v19 = vmul.f32 %v1173_v18, %v359_v17  ;;  %vm366_vm12 = vweird.f32 %v1173_v18  ;;  %v1175_v36 = vpop.eup %1174 }
 0x2ec   : > { %vm367_vm14 = vmor %vm365_vm13, %vm366_vm12  ;;  %v511_v39 = vsel %vm350_vm3, %v1175_v36, 0.0 }
 0x2ed   : > { %v362_v20 = vsub.f32 1.0, %v361_v19 }
 0x2ef   : > { %v363_v23 = vmul.f32 %v1173_v18, %v362_v20 }
 0x2f1   : > { %v364_v26 = vadd.f32 %v1173_v18, %v363_v23 }
 0x2f3   : > { %v368_v28 = vsel %vm367_vm14, %v1173_v18, %v364_v26 }
 0x2f4   : > { %v373_v29 = vsel %vm370_vm15, %v372_v27, %v368_v28 }
 0x2f5   : > { %v374_v30 = vmul.f32 %v1368_v50, %v373_v29 }
 0x2f7   : > { %1109 = vmatmul.msk.f32.vlgmr.msra.gmra.mxu0 %vm350_vm3, %v374_v30 }
 0x316   : > { %v892_v34 = vpop.f32.mrf.mxu1  ;;  %v741_v37 = vpop.xlane.xlu2 %740 }
 0x317   : > { %v895_v35 = vsel %vm350_vm3, %v892_v34, -inf  ;;  %v474_v38 = vpop.f32.mrf.mxu2  ;;  %v742_v42 = vsub.f32 %v736_v12, %v741_v37 }
 0x318   : > { %896 = vmax.xlane.f32.xlu0 %v895_v35 }
 0x319   : > { %v743_v45 = vmul.f32 1.442695, %v742_v42 }
 0x320   : > { %512 = vadd.xlane.f32.xlu0 %v511_v39 }
 0x324   : > { %v819_v40 = vpop.xlane.xlu2 %818 }
 0x325   : > { %v820_v41 = vsub.f32 %v814_v15, %v819_v40 }
 0x327   : > { %v821_v43 = vmul.f32 1.442695, %v820_v41  ;;  %v630_v44 = vpop.f32.mrf.mxu2 }
 0x329   : > { %1176 = vpow2.f32 %v821_v43 }
 0x32a   : > { %1178 = vpow2.f32 %v743_v45 }
 0x32f   : > { %v1385_v24 = vpop.eup %1176  ;;  %v658_v46 = vpop.f32.mrf.mxu2 }
 0x330   : > { %v823_v47 = vsel %vm350_vm3, %v1385_v24, 0.0  ;;  %v661_v48 = vsel %vm350_vm3, %v658_v46, -inf  ;;  %v1390_v49 = vpop.eup %1178 }
 0x331   : > { %824 = vadd.xlane.f32.xlu2 %v823_v47  ;;  %662 = vmax.xlane.f32.xlu1 %v661_v48  ;;  %v745_v50 = vsel %vm350_vm3, %v1390_v49, 0.0 }
 0x339   : > { %746 = vadd.xlane.f32.xlu2 %v745_v50 }
 0x34a   : > { %529 = vrot.lane.b32.xlu1 %v1338_v21, %s1240_s13 }
 0x351   : > { %685 = vrot.lane.b32.xlu2 %v1338_v21, %s1242_s15 }
 0x359   : > { %946 = vrot.lane.b32.xlu2 %v474_v38, %s1245_s21 }
 0x374   : > { %v1423_v50 = vpop.f32.mrf.mxu0 }
 0x38b   : > { %v897_v51 = vpop.xlane.xlu0 %896 }
 0x38c   : > { %v898_v52 = vsub.f32 %v892_v34, %v897_v51 }
 0x38e   : > { %v899_v53 = vmul.f32 1.442695, %v898_v52 }
 0x390   : > { %1180 = vpow2.f32 %v899_v53 }
 0x393   : > { %v513_v56 = vpop.xlane.xlu0 %512 }
 0x394   : > { %1182 = vrcp.f32 %v513_v56  ;;  %v525_v4 = vand.u32 2147483648, %v513_v56  ;;  %vm519_vm1 = vweird.f32 %v513_v56  ;;  %v523_v5 = vand.u32 2147483647, %v513_v56 }
 0x396   : > { %v1399_v54 = vpop.eup %1180  ;;  %v526_v8 = vor.u32 1.1754944e-38, %v525_v4  ;;  %vm524_vm5 = vcmp.eq.f32.partialorder %v523_v5, 8.507059e+37  ;;  %v1001_v5 = vld [vmem:[#allocation2 + $0x78] sm:$0xff] }
 0x397   : > { %v901_v55 = vsel %vm350_vm3, %v1399_v54, 0.0  ;;  %1006 = vmatpush.msrb.mxu3 %v1001_v5 }
 0x398   : > { %902 = vadd.xlane.f32.xlu0 %v901_v55 }
 0x39a   : > { %v1183_v57 = vpop.eup %1182 }
 0x39b   : > { %v515_v59 = vmul.f32 %v1183_v57, %v513_v56  ;;  %vm520_vm0 = vweird.f32 %v1183_v57 }
 0x39c   : > { %vm521_vm4 = vmor %vm519_vm1, %vm520_vm0 }
 0x39d   : > { %v516_v62 = vsub.f32 1.0, %v515_v59 }
 0x39f   : > { %v517_v0 = vmul.f32 %v1183_v57, %v516_v62 }
 0x3a1   : > { %v518_v3 = vadd.f32 %v1183_v57, %v517_v0 }
 0x3a3   : > { %v522_v7 = vsel %vm521_vm4, %v1183_v57, %v518_v3 }
 0x3a4   : > { %v663_v58 = vpop.xlane.xlu1 %662  ;;  %v1403_v63 = vpop.xlane.xlu2 %824  ;;  %v527_v9 = vsel %vm524_vm5, %v526_v8, %v522_v7  ;;  %v999_v7 = vld [vmem:[#allocation2 + $0x68] sm:$0xff]  ;;  %v997_v8 = vld [vmem:[#allocation2 + $0x58] sm:$0xff] }
 0x3a5   : > { %v664_v60 = vsub.f32 %v658_v46, %v663_v58  ;;  %v528_v11 = vmul.f32 %v1175_v36, %v527_v9  ;;  %v837_v55 = vand.u32 2147483648, %v1403_v63  ;;  %vm831_vm5 = vweird.f32 %v1403_v63  ;;  %v996_v9 = vld [vmem:[#allocation2 + $0x50] sm:$0xff] }
 0x3a6   : > { %v835_v57 = vand.u32 2147483647, %v1403_v63 }
 0x3a7   : > { %v665_v61 = vmul.f32 1.442695, %v664_v60  ;;  %v838_v60 = vor.u32 1.1754944e-38, %v837_v55 }
 0x3a9   : > { %1184 = vpow2.f32 %v665_v61 }
 0x3ac   : > { %763 = vrot.lane.b32.xlu0 %v1338_v21, %s1244_s20  ;;  %v747_v6 = vpop.xlane.xlu2 %746 }
 0x3ad   : > { %1186 = vrcp.f32 %v747_v6  ;;  %v759_v22 = vand.u32 2147483648, %v747_v6  ;;  %vm753_vm7 = vweird.f32 %v747_v6  ;;  %v757_v25 = vand.u32 2147483647, %v747_v6 }
 0x3af   : > { %v1407_v1 = vpop.eup %1184  ;;  %v760_v27 = vor.u32 1.1754944e-38, %v759_v22  ;;  %vm758_vm9 = vcmp.eq.f32.partialorder %v757_v25, 8.507059e+37 }
 0x3b0   : > { %v667_v2 = vsel %vm350_vm3, %v1407_v1, 0.0 }
 0x3b1   : > { %668 = vadd.xlane.f32.xlu1 %v667_v2 }
 0x3b3   : > { %v1187_v13 = vpop.eup %1186 }
 0x3b4   : > { %919 = vrot.lane.b32.xlu0 %v1338_v21, %s1245_s21  ;;  %v686_v12 = vpop.permute.xlu2 %685  ;;  %v749_v14 = vmul.f32 %v1187_v13, %v747_v6  ;;  %vm754_vm6 = vweird.f32 %v1187_v13  ;;  %v1000_v6 = vld [vmem:[#allocation2 + $0x70] sm:$0xff] }
 0x3b5   : > { %vm755_vm8 = vmor %vm753_vm7, %vm754_vm6  ;;  %vm836_vm7 = vcmp.eq.f32.partialorder %v835_v57, 8.507059e+37  ;;  %1007 = vmatpush.msrb.mxu3 %v1000_v6 }
 0x3b6   : > { %v750_v16 = vsub.f32 1.0, %v749_v14  ;;  %v991_v14 = vld [vmem:[#allocation2 + $0x28] sm:$0xff] }
 0x3b7   : > { %1008 = vmatpush.msrb.mxu3 %v999_v7 }
 0x3b8   : > { %v751_v17 = vmul.f32 %v1187_v13, %v750_v16  ;;  %v989_v16 = vld [vmem:[#allocation2 + $0x18] sm:$0xff] }
 0x3ba   : > { %v752_v20 = vadd.f32 %v1187_v13, %v751_v17  ;;  %v988_v17 = vld [vmem:[#allocation2 + $0x10] sm:$0xff] }
 0x3bc   : > { %v530_v10 = vpop.permute.xlu1 %529  ;;  %v756_v26 = vsel %vm755_vm8, %v1187_v13, %v752_v20  ;;  %v992_v13 = vld [vmem:[#allocation2 + $0x30] sm:$0xff]  ;;  %v947_v20 = vpop.permute.xlu2 %946  ;;  %vm976_vm8 = vcmask 392192  }
 0x3bd   : > { %550 = vmatpush.msrb.mxu0 %v530_v10  ;;  %v761_v28 = vsel %vm758_vm9, %v760_v27, %v756_v26  ;;  %v995_v10 = vld [vmem:[#allocation2 + $0x48] sm:$0xff]  ;;  %v973_v26 = vsel %vm323_vm2, %v1423_v50, %v947_v20  ;;  %vm978_vm9 = vcmask 523264  }
 0x3be   : > { %1115 = vmatmul.msk.f32.vlgmr.msrb.gmra.mxu0 %vm350_vm3, %v528_v11  ;;  %v762_v33 = vmul.f32 %v1390_v49, %v761_v28  ;;  %v994_v11 = vld [vmem:[#allocation2 + $0x40] sm:$0xff] }
 0x3bf   : > { %706 = vmatpush.msra.mxu0 %v686_v12  ;;  %v993_v12 = vld [vmem:[#allocation2 + $0x38] sm:$0xff] }
 0x3ca   : > { %841 = vrot.lane.b32.xlu1 %v1338_v21, %s1243_s16 }
 0x3d2   : > { %954 = vrot.lane.b32.xlu1 %v630_v44, %s1244_s20 }
 0x40b   : > { %v903_v15 = vpop.xlane.xlu0 %902 }
 0x40c   : > { %1188 = vrcp.f32 %v903_v15  ;;  %v915_v30 = vand.u32 2147483648, %v903_v15  ;;  %vm909_vm11 = vweird.f32 %v903_v15  ;;  %v913_v31 = vand.u32 2147483647, %v903_v15 }
 0x40d   : > { %1190 = vrcp.f32 %v1403_v63 }
 0x40e   : > { %v916_v35 = vor.u32 1.1754944e-38, %v915_v30  ;;  %vm914_vm13 = vcmp.eq.f32.partialorder %v913_v31, 8.507059e+37 }
 0x412   : > { %v1189_v18 = vpop.eup %1188 }
 0x413   : > { %v905_v19 = vmul.f32 %v1189_v18, %v903_v15  ;;  %vm910_vm10 = vweird.f32 %v1189_v18  ;;  %v1191_v38 = vpop.eup %1190  ;;  %v990_v15 = vld [vmem:[#allocation2 + $0x20] sm:$0xff] }
 0x414   : > { %vm911_vm12 = vmor %vm909_vm11, %vm910_vm10  ;;  %v827_v41 = vmul.f32 %v1191_v38, %v1403_v63  ;;  %vm832_vm1 = vweird.f32 %v1191_v38  ;;  %vm980_vm10 = vcmask 654336   ;;  %vm982_vm11 = vcmask 785408  }
 0x415   : > { %v906_v23 = vsub.f32 1.0, %v905_v19  ;;  %vm833_vm6 = vmor %vm831_vm5, %vm832_vm1  ;;  %v986_v19 = vld [vmem:[#allocation2] sm:$0xff] }
 0x416   : > { %v828_v43 = vsub.f32 1.0, %v827_v41 }
 0x417   : > { %v907_v21 = vmul.f32 %v1189_v18, %v906_v23 }
 0x418   : > { %v829_v47 = vmul.f32 %v1191_v38, %v828_v43 }
 0x419   : > { %v908_v29 = vadd.f32 %v1189_v18, %v907_v21 }
 0x41a   : > { %v830_v53 = vadd.f32 %v1191_v38, %v829_v47 }
 0x41b   : > { %v912_v34 = vsel %vm911_vm12, %v1189_v18, %v908_v29  ;;  %v987_v18 = vld [vmem:[#allocation2 + $0x8] sm:$0xff]  ;;  %vm984_vm12 = vcmask 916480  }
 0x41c   : > { %v917_v36 = vsel %vm914_vm13, %v916_v35, %v912_v34  ;;  %v834_v59 = vsel %vm833_vm6, %v1191_v38, %v830_v53  ;;  %v1161_v35 = vld [vmem:[%s1454_s4] ss:$0 sm:$0xff] }
 0x41d   : > { %v918_v40 = vmul.f32 %v1399_v54, %v917_v36  ;;  %v839_v62 = vsel %vm836_vm7, %v838_v60, %v834_v59 }
 0x41e   : > { %v764_v32 = vpop.permute.xlu0 %763  ;;  %v840_v2 = vmul.f32 %v1385_v24, %v839_v62  ;;  %v998_v24 = vld [vmem:[#allocation2 + $0x60] sm:$0xff] }
 0x41f   : > { %784 = vmatpush.msra.mxu2 %v764_v32  ;;  %1009 = vmatpush.msrb.mxu3 %v998_v24 }
 0x420   : > { %1124 = vmatmul.msk.f32.vlgmr.msra.gmra.mxu2 %vm350_vm3, %v762_v33 }
 0x421   : > { %1010 = vmatpush.msrb.mxu3 %v997_v8 }
 0x423   : > { %1011 = vmatpush.msrb.mxu3 %v996_v9 }
 0x424   : > { %v669_v37 = vpop.xlane.xlu1 %668 }
 0x425   : > { %1192 = vrcp.f32 %v669_v37  ;;  %v681_v46 = vand.u32 2147483648, %v669_v37  ;;  %v679_v49 = vand.u32 2147483647, %v669_v37  ;;  %vm675_vm15 = vweird.f32 %v669_v37  ;;  %1012 = vmatpush.msrb.mxu3 %v995_v10 }
 0x426   : > { %v920_v39 = vpop.permute.xlu0 %919 }
 0x427   : > { %940 = vmatpush.msrb.mxu2 %v920_v39  ;;  %v682_v52 = vor.u32 1.1754944e-38, %v681_v46  ;;  %vm680_vm4 = vcmp.eq.f32.partialorder %v679_v49, 8.507059e+37  ;;  %1013 = vmatpush.msrb.mxu3 %v994_v11 }
 0x428   : > { %1130 = vmatmul.msk.f32.vlgmr.msrb.gmra.mxu2 %vm350_vm3, %v918_v40 }
 0x429   : > { %1014 = vmatpush.msrb.mxu3 %v993_v12 }
 0x42b   : > { %v1193_v42 = vpop.eup %1192  ;;  %1015 = vmatpush.msrb.mxu3 %v992_v13 }
 0x42c   : > { %v671_v44 = vmul.f32 %v1193_v42, %v669_v37  ;;  %vm676_vm14 = vweird.f32 %v1193_v42 }
 0x42d   : > { %vm677_vm0 = vmor %vm675_vm15, %vm676_vm14  ;;  %1016 = vmatpush.msrb.mxu3 %v991_v14 }
 0x42e   : > { %v672_v45 = vsub.f32 1.0, %v671_v44 }
 0x42f   : > { %1017 = vmatpush.msrb.mxu3 %v990_v15 }
 0x430   : > { %v673_v48 = vmul.f32 %v1193_v42, %v672_v45 }
 0x431   : > { %1018 = vmatpush.msrb.mxu3 %v989_v16 }
 0x432   : > { %v674_v51 = vadd.f32 %v1193_v42, %v673_v48 }
 0x433   : > { %1019 = vmatpush.msrb.mxu3 %v988_v17 }
 0x434   : > { %v678_v54 = vsel %vm677_vm0, %v1193_v42, %v674_v51 }
 0x435   : > { %v683_v56 = vsel %vm680_vm4, %v682_v52, %v678_v54  ;;  %1020 = vmatpush.msrb.mxu3 %v987_v18 }
 0x436   : > { %v684_v58 = vmul.f32 %v1407_v1, %v683_v56 }
 0x437   : > { %1021 = vmatpush.msrb.mxu3 %v986_v19 }
 0x438   : > { %1121 = vmatmul.msk.f32.vlgmr.msra.gmra.mxu0 %vm350_vm3, %v684_v58 }
 0x43b   : > { %v552_v61 = vpop.f32.mrf.mxu0 }
 0x43c   : > { %950 = vrot.lane.b32.xlu0 %v552_v61, %s1243_s16  ;;  %v842_v0 = vpop.permute.xlu1 %841 }
 0x43d   : > { %862 = vmatpush.msrb.mxu0 %v842_v0 }
 0x440   : > { %1127 = vmatmul.msk.f32.vlgmr.msrb.gmra.mxu0 %vm350_vm3, %v840_v2  ;;  %vm974_vm3 = vcmask 261120  }
 0x444   : > { %v955_v25 = vpop.permute.xlu1 %954 }
 0x4a3   : > { %v786_v3 = vpop.f32.mrf.mxu2 }
 0x4a4   : > { %962 = vrot.lane.b32.xlu0 %v786_v3, %s1239_s12 }
 0x4ab   : > { %v942_v1 = vpop.f32.mrf.mxu2 }
 0x4ae   : > { %v951_v22 = vpop.permute.xlu0 %950 }
 0x4af   : > { %v975_v21 = vsel %vm974_vm3, %v973_v26, %v951_v22 }
 0x4b0   : > { %v977_v28 = vsel %vm976_vm8, %v975_v21, %v955_v25 }
 0x4b5   : > { %v708_v63 = vpop.f32.mrf.mxu0 }
 0x4b6   : > { %958 = vrot.lane.b32.xlu2 %v708_v63, %s1242_s15 }
 0x4bd   : > { %v864_v4 = vpop.f32.mrf.mxu0 }
 0x4be   : > { %970 = vrot.lane.b32.xlu2 %v942_v1, %s1241_s14  ;;  %966 = vrot.lane.b32.xlu1 %v864_v4, %s1240_s13 }
 0x510   : > { %v959_v23 = vpop.permute.xlu2 %958 }
 0x511   : > { %v979_v29 = vsel %vm978_vm9, %v977_v28, %v959_v23 }
 0x516   : > { %v963_v27 = vpop.permute.xlu0 %962 }
 0x517   : > { %v981_v30 = vsel %vm980_vm10, %v979_v29, %v963_v27 }
 0x518   : > { %v971_v32 = vpop.permute.xlu2 %970 }
 0x530   : > { %v967_v31 = vpop.permute.xlu1 %966 }
 0x531   : > { %v983_v33 = vsel %vm982_vm11, %v981_v30, %v967_v31 }
 0x532   : > { %v985_v34 = vsel %vm984_vm12, %v983_v33, %v971_v32 }
 0x533   : > { %1022 = vmatmul.f32.vlgmr.msrb.gmra.mxu3 %v985_v34 }
 0x5b6   : > { %v1023_v36 = vpop.f32.mrf.mxu3 }
 0x5b7   : > { %v1024_v37 = vadd.f32 %v1161_v35, %v1023_v36 }
 0x5b9   : > { %1026 = vst [vmem:[%s236_s28] sm:$0xff] %v1024_v37 }
 0x5ba PF: > { %s16_s18 = sadd.s32 1, %s1234_s18  }
 0x5bb   : > { %p13_p7 = scmp.ge.s32.totalorder %s16_s18, 4  }
 0x5bd   :  { %15 = sbr.rel (!%p13_p7) target bundleno = 1 (0x1), region = 75 }
 0x5c2   :  { %1046 = vsyncpa [#allocation3], 1 }
 0x5c3   :  { %1048 = vsyncpa [#allocation3 + $0x1], 1 }

</bundles_post_ra>
